<compile_context>
chip_gen: v6e
topology: v6e:2x2x1
jax: 0.10.0
libtpu: 0.0.40
codegen_flags: <defaults>
</compile_context>

<pallas_src>
import functools

import jax
import jax.numpy as jnp
from jax.experimental import pallas as pl
from jax.experimental.pallas import tpu as pltpu

_LANE = 128
_VMEM_LIMIT = 32 * 1024 * 1024  # explicit scoped-VMEM budget (plenty of headroom)


def _round_up(x, m):
    return ((x + m - 1) // m) * m


# ---------------------------------------------------------------------------
# Pallas kernels
# ---------------------------------------------------------------------------
def _feature_proj_kernel(x_ref, wt_ref, out_ref):
    """H = X @ W^T  (tiny matmul, computed once; output lane-padded, bf16)."""
    out_ref[...] = jnp.dot(
        x_ref[...], wt_ref[...], preferred_element_type=jnp.float32
    ).astype(out_ref.dtype)


def _gcn_agg_kernel(adj_ref, h_ref, b_ref, out_ref, acc_ref, *, apply_sigmoid):
    """Tiled out = act(A_hat @ H + b); grid = (row tiles, contraction tiles)."""
    k = pl.program_id(1)

    @pl.when(k == 0)
    def _():
        acc_ref[...] = jnp.zeros_like(acc_ref)

    acc_ref[...] += jnp.dot(
        adj_ref[...], h_ref[...], preferred_element_type=jnp.float32
    )

    @pl.when(k == pl.num_programs(1) - 1)
    def _():
        y = jnp.maximum(acc_ref[...] + b_ref[...], 0.0)  # ReLU
        if apply_sigmoid:                                # fused epilogue (EUP)
            y = jax.nn.sigmoid(y)
        out_ref[...] = y.astype(out_ref.dtype)


def _cos_sigmoid_kernel(a_ref, b_ref, out_ref):
    """Column-wise cosine similarity (eps=1e-6) + sigmoid.

    Inputs are (hidden_pad, TP) -> reduce over sublanes, lane-dense (1, TP) out.
    """
    a = a_ref[...].astype(jnp.float32)
    b = b_ref[...].astype(jnp.float32)
    eps = jnp.float32(1e-6)
    dot = jnp.sum(a * b, axis=0, keepdims=True)
    na = jnp.sqrt(jnp.sum(a * a, axis=0, keepdims=True))
    nb = jnp.sqrt(jnp.sum(b * b, axis=0, keepdims=True))
    cos = dot / (jnp.maximum(na, eps) * jnp.maximum(nb, eps))
    out_ref[...] = jax.nn.sigmoid(cos)


# ---------------------------------------------------------------------------
# Glue (plain JAX): normalized adjacency, parameter setup
# ---------------------------------------------------------------------------
def normalized_adjacency(edge_index, num_nodes):
    """Dense D^{-1/2} (A + I) D^{-1/2}, matching PyG GCNConv's gcn_norm."""
    # TODO(synk): dense N x N adjacency; a sparse (segment-sum / blocked CSR)
    # formulation would avoid the O(N^2) HBM stream for realistic sparsity.
    src = edge_index[0]
    dst = edge_index[1]
    a = jnp.zeros((num_nodes, num_nodes), jnp.float32)
    a = a.at[dst, src].add(1.0)                       # message src -> dst
    a = a + jnp.eye(num_nodes, dtype=jnp.float32)     # add self-loops
    deg = a.sum(axis=1)                               # in-degree incl. self
    dinv = jnp.where(deg > 0.0, 1.0 / jnp.sqrt(deg), 0.0)
    return dinv[:, None] * a * dinv[None, :]


def init_params(key, num_node_features, hidden_dim=16):
    k1, k2, k3, k4 = jax.random.split(key, 4)
    glorot = jax.nn.initializers.glorot_uniform()
    return {
        # PyG GCNConv: lin.weight has shape (out_channels, in_channels)
        "conv1_w": glorot(k1, (hidden_dim, num_node_features), jnp.float32),
        "conv1_b": jnp.zeros((hidden_dim,), jnp.float32),
        # conv2 exists in __init__ but is unused in forward()
        "conv2_w": glorot(k2, (hidden_dim, hidden_dim), jnp.float32),
        "conv2_b": jnp.zeros((hidden_dim,), jnp.float32),
    }


# ---------------------------------------------------------------------------
# Forward
# ---------------------------------------------------------------------------
def edge_gcn_forward(x, edge_index, params, decode_index=None):
    n, f = x.shape
    w1 = params["conv1_w"]            # (hidden, F)
    b1 = params["conv1_b"]            # (hidden,)
    hidden = w1.shape[0]

    n_pad = _round_up(n, _LANE)
    h_pad = _round_up(hidden, _LANE)
    tm = min(512, n_pad)              # row tile (sweepable)
    tk = min(512, n_pad)              # contraction tile (sweepable)

    # Dense normalized adjacency, zero-padded, cast to bf16 (dominant stream).
    adj = normalized_adjacency(edge_index, n)
    adj = jnp.pad(adj, ((0, n_pad - n), (0, n_pad - n))).astype(jnp.bfloat16)

    # ---- hoisted feature projection: H = X @ W^T (computed once) ----------
    x_p = jnp.pad(x.astype(jnp.float32), ((0, n_pad - n), (0, 0)))
    wt_p = jnp.pad(w1.T.astype(jnp.float32), ((0, 0), (0, h_pad - hidden)))
    proj = pl.pallas_call(
        _feature_proj_kernel,
        grid=(n_pad // tm,),
        in_specs=[
            pl.BlockSpec((tm, f), lambda i: (i, 0)),
            pl.BlockSpec((f, h_pad), lambda i: (0, 0)),
        ],
        out_specs=pl.BlockSpec((tm, h_pad), lambda i: (i, 0)),
        out_shape=jax.ShapeDtypeStruct((n_pad, h_pad), jnp.bfloat16),
        compiler_params=pltpu.CompilerParams(
            dimension_semantics=("parallel",),
            vmem_limit_bytes=_VMEM_LIMIT,
        ),
    )
    h_feat = proj(x_p, wt_p)

    # ---- tiled aggregation: act(A_hat @ H + b), fused ReLU(+sigmoid) ------
    b_p = jnp.pad(b1.astype(jnp.float32), (0, h_pad - hidden)).reshape(1, h_pad)
    apply_sigmoid = decode_index is None
    agg = pl.pallas_call(
        functools.partial(_gcn_agg_kernel, apply_sigmoid=apply_sigmoid),
        grid_spec=pltpu.PrefetchScalarGridSpec(
            num_scalar_prefetch=0,
            grid=(n_pad // tm, n_pad // tk),
            in_specs=[
                pl.BlockSpec((tm, tk), lambda i, k: (i, k)),      # A_hat tile
                pl.BlockSpec((tk, h_pad), lambda i, k: (k, 0)),   # H K-slab
                pl.BlockSpec((1, h_pad), lambda i, k: (0, 0)),    # bias
            ],
            out_specs=pl.BlockSpec((tm, h_pad), lambda i, k: (i, 0)),
            scratch_shapes=[pltpu.VMEM((tm, h_pad), jnp.float32)],
        ),
        out_shape=jax.ShapeDtypeStruct((n_pad, h_pad), jnp.float32),
        compiler_params=pltpu.CompilerParams(
            dimension_semantics=("parallel", "arbitrary"),
            vmem_limit_bytes=_VMEM_LIMIT,
        ),
    )
    h_out = agg(adj, h_feat, b_p)

    # F.dropout(..., training=False) -> identity (see TODO at top of file).

    if decode_index is None:
        # sigmoid already fused into the aggregation epilogue
        return h_out[:n, :hidden]

    # Decode path: h_out here is ReLU(conv1) (padded hidden columns are exactly
    # zero, so they do not perturb the cosine).  Gather pairs, transposed so
    # the cosine kernel reduces over sublanes and stores lane-dense (1, P).
    # TODO(synk): fuse the gather via PrefetchScalarGridSpec + pl.Element rows.
    p = decode_index.shape[1]
    p_pad = _round_up(p, _LANE)
    a_t = jnp.pad(h_out[decode_index[0, :], :].T, ((0, 0), (0, p_pad - p)))
    b_t = jnp.pad(h_out[decode_index[1, :], :].T, ((0, 0), (0, p_pad - p)))

    tp = min(512, p_pad)
    cos = pl.pallas_call(
        _cos_sigmoid_kernel,
        grid=(p_pad // tp,),
        in_specs=[
            pl.BlockSpec((h_pad, tp), lambda i: (0, i)),
            pl.BlockSpec((h_pad, tp), lambda i: (0, i)),
        ],
        out_specs=pl.BlockSpec((1, tp), lambda i: (0, i)),
        out_shape=jax.ShapeDtypeStruct((1, p_pad), jnp.float32),
        compiler_params=pltpu.CompilerParams(
            dimension_semantics=("parallel",),
            vmem_limit_bytes=_VMEM_LIMIT,
        ),
    )
    return cos(a_t, b_t)[0, :p]


# ---------------------------------------------------------------------------
# Demo
# ---------------------------------------------------------------------------
if __name__ == "__main__":
    key = jax.random.PRNGKey(0)
    k_x, k_e, k_d, k_p = jax.random.split(key, 4)

    num_nodes = 16
    num_node_features = 8
    hidden_dim = 16
    num_edges = 32
    num_decode_pairs = 8

    x = jax.random.normal(k_x, (num_nodes, num_node_features), jnp.float32)
    edge_index = jax.random.randint(k_e, (2, num_edges), 0, num_nodes, jnp.int32)
    decode_index = jax.random.randint(
        k_d, (2, num_decode_pairs), 0, num_nodes, jnp.int32
    )

    params = init_params(k_p, num_node_features, hidden_dim)

    # Path 1: no decode_index -> sigmoid over node embeddings, shape (N, H)
    out_nodes = edge_gcn_forward(x, edge_index, params, decode_index=None)
    out_nodes = jax.block_until_ready(out_nodes)
    assert out_nodes.shape == (num_nodes, hidden_dim)
    assert bool(jnp.all(jnp.isfinite(out_nodes)))

    # Path 2: with decode_index -> sigmoid(cosine similarity), shape (P,)
    out_edges = edge_gcn_forward(x, edge_index, params, decode_index=decode_index)
    out_edges = jax.block_until_ready(out_edges)
    assert out_edges.shape == (num_decode_pairs,)
    assert bool(jnp.all(jnp.isfinite(out_edges)))

    print("KERNEL_OK")
</pallas_src>

<mosaic_0001>
module attributes {stable_mosaic.version = 11 : i64} {
  func.func @_feature_proj_kernel(%arg0: i32, %arg1: memref<128x8xf32, #tpu.memory_space<vmem>>, %arg2: memref<8x128xf32, #tpu.memory_space<vmem>>, %arg3: memref<128x128xbf16, #tpu.memory_space<vmem>>) attributes {dimension_semantics = [#tpu.dimension_semantics<parallel>], iteration_bounds = array<i64: 1>, scalar_prefetch = 0 : i64, scratch_operands = 0 : i64, tpu.core_type = #tpu.core_type<tc>, window_params = [{transform_indices = @transform_0, window_bounds = array<i64: 128, 8>}, {pipeline_mode = #tpu.pipeline_mode<synchronous>, transform_indices = @transform_1, window_bounds = array<i64: 8, 128>}, {transform_indices = @transform_2, window_bounds = array<i64: 128, 128>}]} {
    %c0 = arith.constant 0 : index
    %c0_0 = arith.constant 0 : index
    %0 = vector.load %arg1[%c0, %c0_0] : memref<128x8xf32, #tpu.memory_space<vmem>>, vector<128x8xf32>
    %c0_1 = arith.constant 0 : index
    %c0_2 = arith.constant 0 : index
    %1 = vector.load %arg2[%c0_1, %c0_2] : memref<8x128xf32, #tpu.memory_space<vmem>>, vector<8x128xf32>
    %cst = arith.constant dense<0.000000e+00> : vector<128x128xf32>
    %2 = tpu.matmul %0, %1, %cst {dimension_numbers = #tpu.dot_dimension_numbers<[1], [0], [0], [1], [0, 0, 1, 1], [], []>} : vector<128x8xf32>, vector<8x128xf32>, vector<128x128xf32> -> vector<128x128xf32>
    %3 = arith.truncf %2 : vector<128x128xf32> to vector<128x128xbf16>
    %c0_3 = arith.constant 0 : index
    %c0_4 = arith.constant 0 : index
    %4 = vector.load %arg3[%c0_3, %c0_4] : memref<128x128xbf16, #tpu.memory_space<vmem>>, vector<128x128xbf16>
    tpu.vector_store %arg3[%c0_3, %c0_4], %3 {strides = array<i32>} : memref<128x128xbf16, #tpu.memory_space<vmem>>, vector<128x128xbf16>,
    return
  }
  func.func @transform_0(%arg0: i32) -> (i32, i32) {
    %c0_i32 = arith.constant 0 : i32
    %c0_i32_0 = arith.constant 0 : i32
    return %arg0, %c0_i32 : i32, i32
  }
  func.func @transform_1(%arg0: i32) -> (i32, i32) {
    %c0_i32 = arith.constant 0 : i32
    %c0_i32_0 = arith.constant 0 : i32
    %c0_i32_1 = arith.constant 0 : i32
    return %c0_i32, %c0_i32_0 : i32, i32
  }
  func.func @transform_2(%arg0: i32) -> (i32, i32) {
    %c0_i32 = arith.constant 0 : i32
    %c0_i32_0 = arith.constant 0 : i32
    return %arg0, %c0_i32 : i32, i32
  }
}

</mosaic_0001>

<bundles_post_ra>
// kernel: tpu_custom_call.1
= control target key start
LH: loop header
LB: loop body
LE: loop exit
PB: predicated region body
PF: predicated region fallthrough
CT: control target
= control target key end

     0   :  { %vm29_vm0 = vcmask 64512   ;;  %s572_s0 = inlined_call_operand.vmem [shape: f32[128,8], index: 0, kind: input, shape index: {}]   ;;  %s573_s1 = inlined_call_operand.vmem [shape: f32[8,128], index: 1, kind: input, shape index: {}]   ;;  %s574_s2 = inlined_call_operand.hbm [shape: bf16[128,128], index: 2, kind: output, shape index: {}]  }
   0x1   :  { %v28_v0 = vld [vmem:[%s573_s1] sm:$0xff]  ;;  %v13_v3 = vld [vmem:[%s572_s0 + $0x8] sm:$0xff]  ;;  %v14_v5 = vld [vmem:[%s572_s0 + $0x10] sm:$0xff] }
   0x2   :  { %v12_v1 = vld [vmem:[%s572_s0] sm:$0xff]  ;;  %431 = vmatprep.subr.mxu0 %v28_v0  ;;  %457 = vmatprep.subr.mxu1 %v28_v0  ;;  %v21_v4 = vld [vmem:[%s572_s0 + $0x48] sm:$0xff]  ;;  %v22_v6 = vld [vmem:[%s572_s0 + $0x50] sm:$0xff] }
   0x3   :  { %v20_v2 = vld [vmem:[%s572_s0 + $0x40] sm:$0xff]  ;;  %432 = vmatpush3.msra.mxu0 %v28_v0  ;;  %458 = vmatpush3.msra.mxu1 %v28_v0  ;;  %v15_v7 = vld [vmem:[%s572_s0 + $0x18] sm:$0xff] }
   0x4   :  { %433 = vmatprep.mubr.msk.f32.mxu0 %vm29_vm0, %v12_v1  ;;  %445 = vmatprep.mubr.msk.f32.mxu1 %vm29_vm0, %v20_v2  ;;  %v23_v8 = vld [vmem:[%s572_s0 + $0x58] sm:$0xff] }
   0x5   :  { %434 = vmatmul.mubr.msk.f32.vlgmr.msra.gmra.mxu0 %vm29_vm0, %v13_v3  ;;  %446 = vmatmul.mubr.msk.f32.vlgmr.msra.gmra.mxu1 %vm29_vm0, %v21_v4 }
   0x6   :  { %436 = vmatprep.mubr.msk.f32.mxu0 %vm29_vm0, %v14_v5  ;;  %448 = vmatprep.mubr.msk.f32.mxu1 %vm29_vm0, %v22_v6 }
   0x7   :  { %7 = vsyncpa [#allocation3], 0  ;;  %v16_v9 = vld [vmem:[%s572_s0 + $0x20] sm:$0xff]  ;;  %v17_v11 = vld [vmem:[%s572_s0 + $0x28] sm:$0xff] }
   0x8   :  { %v24_v10 = vld [vmem:[%s572_s0 + $0x60] sm:$0xff]  ;;  %v25_v12 = vld [vmem:[%s572_s0 + $0x68] sm:$0xff]  ;;  %v18_v13 = vld [vmem:[%s572_s0 + $0x30] sm:$0xff] }
   0x9   :  { %437 = vmatmul.mubr.msk.f32.gmra.mxu0 %vm29_vm0, %v15_v7  ;;  %449 = vmatmul.mubr.msk.f32.gmra.mxu1 %vm29_vm0, %v23_v8  ;;  %v26_v14 = vld [vmem:[%s572_s0 + $0x70] sm:$0xff]  ;;  %v19_v15 = vld [vmem:[%s572_s0 + $0x38] sm:$0xff] }
   0xa   :  { %439 = vmatprep.mubr.msk.f32.mxu0 %vm29_vm0, %v16_v9  ;;  %451 = vmatprep.mubr.msk.f32.mxu1 %vm29_vm0, %v24_v10  ;;  %v27_v16 = vld [vmem:[%s572_s0 + $0x78] sm:$0xff]  ;;  %s484_s0 = smov [#allocation2]  }
   0xb   :  { %s308_s14 = sshll.u32 %s484_s0, 4  ;;  %s309_s14 = int_to_ptr.vmem [resolvable:$true] %s308_s14 }
   0xc   :  { %s462_s15 = scalar_lea.vmem %s309_s14, 1024  ;;  %p467_p1 = scmp.lt.s32.totalorder %s309_s14, %s309_s14 }
   0xd   :  { %440 = vmatmul.mubr.msk.f32.gmra.mxu0 %vm29_vm0, %v17_v11  ;;  %452 = vmatmul.mubr.msk.f32.gmra.mxu1 %vm29_vm0, %v25_v12  ;;  %p463_p0 = scmp.ne.s32.totalorder %s309_s14, %s462_s15  ;;  %p468_p2 = scmp.lt.s32.totalorder %s462_s15, %s462_s15 }
   0xe   :  { %442 = vmatprep.mubr.msk.f32.mxu0 %vm29_vm0, %v18_v13  ;;  %454 = vmatprep.mubr.msk.f32.mxu1 %vm29_vm0, %v26_v14 }
   0xf   :  { %p469_p3 = por %p468_p2, %p467_p1 }
  0x11   :  { %443 = vmatmul.mubr.msk.f32.gmra.mxu0 %vm29_vm0, %v19_v15  ;;  %455 = vmatmul.mubr.msk.f32.gmra.mxu1 %vm29_vm0, %v27_v16  ;;  %p470_p4 = pnand %p469_p3, %p463_p0 }
  0xc5   :  { %v435_v17 = vpop.f32.mrf.mxu0  ;;  %v447_v18 = vpop.f32.mrf.mxu1 }
  0xc7   :  { %v144_v19 = vpop.f32.mrf.mxu0  ;;  %v184_v20 = vpop.f32.mrf.mxu1 }
  0xc8   :  { %v370_v21 = vpack.c.bf16 %v435_v17, %v144_v19  ;;  %v390_v22 = vpack.c.bf16 %v447_v18, %v184_v20 }
  0xc9   :  { %v438_v23 = vpop.f32.mrf.mxu0  ;;  %v450_v24 = vpop.f32.mrf.mxu1 }
  0xca   :  { %371 = vst [vmem:[#allocation2] sm:$0xff] %v370_v21   ;;  %410 = vst [vmem:[#allocation2 + $0x20] sm:$0xff] %v390_v22  }
  0xcb   :  { %v154_v25 = vpop.f32.mrf.mxu0  ;;  %v194_v26 = vpop.f32.mrf.mxu1 }
  0xcc   :  { %v375_v27 = vpack.c.bf16 %v438_v23, %v154_v25  ;;  %v395_v28 = vpack.c.bf16 %v450_v24, %v194_v26 }
  0xcd   :  { %v441_v29 = vpop.f32.mrf.mxu0  ;;  %v453_v30 = vpop.f32.mrf.mxu1 }
  0xce   :  { %407 = vst [vmem:[#allocation2 + $0x8] sm:$0xff] %v375_v27   ;;  %411 = vst [vmem:[#allocation2 + $0x28] sm:$0xff] %v395_v28  }
  0xcf   :  { %v164_v31 = vpop.f32.mrf.mxu0  ;;  %v204_v32 = vpop.f32.mrf.mxu1 }
  0xd0   :  { %v380_v33 = vpack.c.bf16 %v441_v29, %v164_v31  ;;  %v400_v34 = vpack.c.bf16 %v453_v30, %v204_v32 }
  0xd1   :  { %v444_v35 = vpop.f32.mrf.mxu0  ;;  %v456_v36 = vpop.f32.mrf.mxu1 }
  0xd2   :  { %408 = vst [vmem:[#allocation2 + $0x10] sm:$0xff] %v380_v33   ;;  %412 = vst [vmem:[#allocation2 + $0x30] sm:$0xff] %v400_v34  }
  0xd3   :  { %v174_v37 = vpop.f32.mrf.mxu0  ;;  %v214_v38 = vpop.f32.mrf.mxu1 }
  0xd4   :  { %v385_v39 = vpack.c.bf16 %v444_v35, %v174_v37  ;;  %v405_v40 = vpack.c.bf16 %v456_v36, %v214_v38 }
  0xd6   :  { %409 = vst [vmem:[#allocation2 + $0x18] sm:$0xff] %v385_v39   ;;  %413 = vst [vmem:[#allocation2 + $0x38] sm:$0xff] %v405_v40  }
  0xd7   :  { %473 = shalt.err (!%p470_p4)
}
  0xd8   :  { %s485_s16 = smov 64   ;;  %s486_s17 = smov 4  }
  0xd9   :  { %314 = dma.vmem_to_hbm [thread:$0]  %s309_s14, 1024, %s574_s2, [#allocation3], %s485_s16, %s485_s16, %s486_s17  }
  0xda   :  { %482 = dma.done.wait [#allocation3], 1024  }
  0xdb   :  { %483 = vsyncadd [#allocation3], 4294966272 }
  0xdc   :  { %318 = vsyncpa [#allocation3], 1 }

</bundles_post_ra>
